<compile_context>
chip_gen: v7x
topology: tpu7x:2x2x1
jax: 0.10.0
libtpu: 0.0.40
codegen_flags: <defaults>
</compile_context>

<pallas_src>
import functools

import jax
import jax.numpy as jnp
from jax import lax
from jax.experimental import pallas as pl
from jax.experimental.pallas import tpu as pltpu


_W_PAD_MULTIPLE = 512  # both weight dims pre-padded to this -> no per-call weight copy


def _round_up(x, m):
    return (x + m - 1) // m * m


def _maybe_cast(x, dt):
    return x if x.dtype == dt else x.astype(dt)


def _vmem_capacity_bytes():
    try:
        return int(pltpu.get_tpu_info().vmem_capacity_bytes)
    except Exception:
        return 128 * 1024 * 1024  # v5e / v6e physical VMEM


# ---------------------------------------------------------------------------
# Generic tiled matmul:  a @ (b.T if trans_b else b)
# ---------------------------------------------------------------------------

def _mm_kernel_single_k(a_ref, b_ref, o_ref, *, b_cdim):
    """Full K in one grid step: no f32 scratch accumulator needed."""
    a = a_ref[...]
    b = b_ref[...]
    if a.dtype != b.dtype:  # static (trace-time) branch; promote narrower operand
        common = jnp.promote_types(a.dtype, b.dtype)
        a, b = a.astype(common), b.astype(common)
    o_ref[...] = lax.dot_general(
        a, b, (((1,), (b_cdim,)), ((), ())),
        preferred_element_type=jnp.float32,
    ).astype(o_ref.dtype)


def _mm_kernel_multi_k(a_ref, b_ref, o_ref, acc_ref, *, b_cdim):
    """K split over grid axis 2: f32 VMEM accumulator across K steps."""

    @pl.when(pl.program_id(2) == 0)
    def _init():
        acc_ref[...] = jnp.zeros_like(acc_ref)

    a = a_ref[...]
    b = b_ref[...]
    if a.dtype != b.dtype:
        common = jnp.promote_types(a.dtype, b.dtype)
        a, b = a.astype(common), b.astype(common)
    acc_ref[...] += lax.dot_general(
        a, b, (((1,), (b_cdim,)), ((), ())),
        preferred_element_type=jnp.float32,
    )

    @pl.when(pl.program_id(2) == pl.num_programs(2) - 1)
    def _finalize():
        o_ref[...] = acc_ref[...].astype(o_ref.dtype)


def _pad2(x, rows, cols):
    pr, pc = rows - x.shape[0], cols - x.shape[1]
    return jnp.pad(x, ((0, pr), (0, pc))) if (pr or pc) else x


def _tiled_matmul(a, b, *, trans_b=False, out_dtype=jnp.float32,
                  tm_target=512, tn_target=512):
    """a @ (b.T if trans_b else b) as a tiled Pallas kernel.

    b may be pre-padded with zeros along either dim (e.g. the prepared projection
    weight); `a` is zero-padded per call to match.  The transpose is folded into
    the contraction dims / BlockSpec index_map and never materialized.  Returns
    the PADDED (Mp, Np) output; the caller slices the logical region.
    """
    M, Ka = a.shape
    if trans_b:
        N, Kb = b.shape
        b_cdim = 1
    else:
        Kb, N = b.shape
        b_cdim = 0
    assert abs(Ka - Kb) < _W_PAD_MULTIPLE, (a.shape, b.shape, trans_b)
    K = max(Ka, Kb)

    a_bytes = jnp.dtype(a.dtype).itemsize
    b_bytes = jnp.dtype(b.dtype).itemsize
    o_bytes = jnp.dtype(out_dtype).itemsize

    # Tiles are multiples of 128 -> lane/sublane legal for f32 and packed bf16.
    tm = min(tm_target, _round_up(M, 128))
    tn = min(tn_target, _round_up(N, 128))
    Kp = _round_up(K, 128)

    # Full-K by default; halve tk only if the double-buffered working set would
    # overflow the per-generation VMEM budget (64 MiB on v7x, 128 MiB on v5e/v6e).
    capacity = _vmem_capacity_bytes()
    tile_budget = min(40 * 1024 * 1024, capacity // 2 - 4 * 1024 * 1024)

    def est(tk_):
        e = 2 * tm * tk_ * a_bytes + 2 * tk_ * tn * b_bytes + 2 * tm * tn * o_bytes
        if tk_ < Kp:
            e += tm * tn * 4  # f32 accumulator scratch
        return e

    tk = Kp
    while est(tk) > tile_budget and tk % 256 == 0:
        tk //= 2  # Kp stays an exact multiple of tk; tk stays a multiple of 128

    Mp, Np = _round_up(M, tm), _round_up(N, tn)
    kt = Kp // tk

    a_p = _pad2(a, Mp, Kp)
    if trans_b:
        # NOTE(review): (tn, tk) RHS contracts on the lane dim; irrelevant while
        # HBM-bound. If a compute-bound regime appears, pre-transpose the operand.
        b_p = _pad2(b, Np, Kp)
        b_block = (tn, tk)
        b_index = (lambda i, j: (j, 0)) if kt == 1 else (lambda i, j, k: (j, k))
    else:
        b_p = _pad2(b, Kp, Np)
        b_block = (tk, tn)
        b_index = (lambda i, j: (0, j)) if kt == 1 else (lambda i, j, k: (k, j))

    if kt == 1:
        grid = (Mp // tm, Np // tn)
        a_index = lambda i, j: (i, 0)          # constant across the j sweep -> no re-DMA
        o_index = lambda i, j: (i, j)
        kernel = functools.partial(_mm_kernel_single_k, b_cdim=b_cdim)
        scratch = []
        semantics = ("parallel", "parallel")
    else:
        grid = (Mp // tm, Np // tn, kt)
        a_index = lambda i, j, k: (i, k)
        o_index = lambda i, j, k: (i, j)
        kernel = functools.partial(_mm_kernel_multi_k, b_cdim=b_cdim)
        scratch = [pltpu.VMEM((tm, tn), jnp.float32)]
        semantics = ("parallel", "parallel", "arbitrary")

    vmem_limit = int(min(capacity - 8 * 1024 * 1024,
                         max(32 * 1024 * 1024, est(tk) + 16 * 1024 * 1024)))

    # TODO(synk): if DMA is still exposed after the tile growth (profile), add
    # pipeline_mode=pl.Buffered(3) on the streamed (weight-side) BlockSpec only.
    out = pl.pallas_call(
        kernel,
        out_shape=jax.ShapeDtypeStruct((Mp, Np), out_dtype),
        grid_spec=pltpu.PrefetchScalarGridSpec(
            num_scalar_prefetch=0,
            grid=grid,
            in_specs=[
                pl.BlockSpec((tm, tk), a_index),
                pl.BlockSpec(b_block, b_index),
            ],
            out_specs=pl.BlockSpec((tm, tn), o_index),
            scratch_shapes=scratch,
        ),
        compiler_params=pltpu.CompilerParams(
            dimension_semantics=semantics,
            vmem_limit_bytes=vmem_limit,
        ),
    )(a_p, b_p)
    return out  # padded; caller slices


# ---------------------------------------------------------------------------
# Attention forward
# ---------------------------------------------------------------------------

def prepare_projection_weight(weight, compute_dtype=jnp.bfloat16):
    """One-time (model-load) cast + pad of the nn.Linear weight.

    Both dims are zero-padded to multiples of 512 so that, whichever side of the
    attention is projected at call time, no per-call HBM copy of the weight is
    ever made (only the small activations are padded per call), and the N-tile
    size of 512 divides the padded dims exactly.
    """
    r, c = weight.shape
    rp, cp = _round_up(r, _W_PAD_MULTIPLE), _round_up(c, _W_PAD_MULTIPLE)
    w = _maybe_cast(weight, compute_dtype)
    if (rp, cp) != (r, c):
        w = jnp.pad(w, ((0, rp - r), (0, cp - c)))
    return w


def attention_forward(img_ft, txt_ft, weight, *, img2txt=True,
                      compute_dtype=jnp.bfloat16):
    """Pallas port of Attention.forward (dropout / bn = Identity).

    img_ft: (B, img_dim)
    txt_ft: (n_txt, text_dim)
    weight: nn.Linear weight, (text_dim, img_dim) if img2txt else (img_dim, text_dim),
            ideally pre-processed once with prepare_projection_weight().
    returns: float32 attention scores, torch-style .squeeze() of (B, n_txt).
    """
    B, img_dim = img_ft.shape
    n_txt, text_dim = txt_ft.shape
    exp_shape = (text_dim, img_dim) if img2txt else (img_dim, text_dim)
    assert all(ws >= es and ws - es < _W_PAD_MULTIPLE
               for ws, es in zip(weight.shape, exp_shape)), (weight.shape, exp_shape)

    img = _maybe_cast(img_ft, compute_dtype)
    txt = _maybe_cast(txt_ft, compute_dtype)
    w = _maybe_cast(weight, compute_dtype)  # no-op if prepared

    # Cheaper association: project the smaller side so the (img_dim x text_dim)
    # weight is streamed from HBM exactly once per M-tile of the small side.
    if n_txt <= B:
        # txt_p = txt @ (W.T if not img2txt else W)  ->  (n_txt_p, img_dim_p)
        # Small intermediate: keep it f32 (precision; negligible extra HBM traffic).
        txt_p = _tiled_matmul(txt, w, trans_b=not img2txt, out_dtype=jnp.float32)
        scores = _tiled_matmul(img, txt_p, trans_b=True, out_dtype=jnp.float32)
    else:
        # img_p = img @ (W.T if img2txt else W)      ->  (B_p, text_dim_p)
        # Large intermediate: keep bf16 to avoid doubling its HBM round-trip.
        img_p = _tiled_matmul(img, w, trans_b=img2txt, out_dtype=compute_dtype)
        scores = _tiled_matmul(img_p, txt, trans_b=True, out_dtype=jnp.float32)

    scores = scores[:B, :n_txt]
    # torch's .squeeze() drops all size-1 dims (e.g. B == 1 -> (n_txt,)).
    return jnp.squeeze(scores)


def _reference(img_ft, txt_ft, weight, img2txt=True):
    if img2txt:
        img_p = img_ft @ weight.T
        return img_p @ txt_ft.T
    txt_p = txt_ft @ weight.T
    return img_ft @ txt_p.T


if __name__ == "__main__":
    key = jax.random.PRNGKey(0)

    configs = [
        # (img2txt, B, img_dim, text_dim, n_txt) -- small, padding-exercising
        (True, 32, 128, 192, 16),    # n_txt <= B  -> project-txt path (f32 intermediate)
        (False, 16, 128, 192, 48),   # n_txt  > B  -> project-img path (bf16 intermediate)
    ]

    for img2txt, B, img_dim, text_dim, n_txt in configs:
        k_img, k_txt, k_w, key = jax.random.split(key, 4)
        img_ft = jax.random.normal(k_img, (B, img_dim), dtype=jnp.float32)
        txt_ft = jax.random.normal(k_txt, (n_txt, text_dim), dtype=jnp.float32)
        w_shape = (text_dim, img_dim) if img2txt else (img_dim, text_dim)
        weight = 0.02 * jax.random.normal(k_w, w_shape, dtype=jnp.float32)

        # One-time weight preparation (cast + pad) -- happens once at "model load",
        # never inside the per-call path.
        w_prep = prepare_projection_weight(weight)

        scores = attention_forward(img_ft, txt_ft, w_prep, img2txt=img2txt)
        scores = jax.block_until_ready(scores)

        ref = _reference(img_ft, txt_ft, weight, img2txt=img2txt)
        assert scores.shape == (B, n_txt), scores.shape
        # bf16 inputs + reassociated matmuls -> relaxed tolerance vs f32 reference.
        assert jnp.allclose(scores, ref, atol=1e-1, rtol=2e-2), (
            "mismatch vs reference",
            (img2txt, B, img_dim, text_dim, n_txt),
            float(jnp.max(jnp.abs(scores - ref))),
        )

    print("KERNEL_OK")
</pallas_src>

<mosaic_0001>
module attributes {stable_mosaic.version = 11 : i64} {
  func.func @_mm_kernel_single_k(%arg0: i32, %arg1: i32, %arg2: memref<128x512xbf16, #tpu.memory_space<vmem>>, %arg3: memref<512x512xbf16, #tpu.memory_space<vmem>>, %arg4: memref<128x512xf32, #tpu.memory_space<vmem>>) attributes {dimension_semantics = [#tpu.dimension_semantics<parallel>, #tpu.dimension_semantics<parallel>], iteration_bounds = array<i64: 1, 1>, scalar_prefetch = 0 : i64, scratch_operands = 0 : i64, tpu.core_type = #tpu.core_type<tc>, window_params = [{transform_indices = @transform_0, window_bounds = array<i64: 128, 512>}, {transform_indices = @transform_1, window_bounds = array<i64: 512, 512>}, {transform_indices = @transform_2, window_bounds = array<i64: 128, 512>}]} {
    %c0 = arith.constant 0 : index
    %c0_0 = arith.constant 0 : index
    %0 = vector.load %arg2[%c0, %c0_0] : memref<128x512xbf16, #tpu.memory_space<vmem>>, vector<128x512xbf16>
    %c0_1 = arith.constant 0 : index
    %c0_2 = arith.constant 0 : index
    %1 = vector.load %arg3[%c0_1, %c0_2] : memref<512x512xbf16, #tpu.memory_space<vmem>>, vector<512x512xbf16>
    %cst = arith.constant dense<0.000000e+00> : vector<128x512xf32>
    %2 = tpu.matmul %0, %1, %cst {dimension_numbers = #tpu.dot_dimension_numbers<[1], [0], [0], [1], [0, 0, 1, 1], [], []>} : vector<128x512xbf16>, vector<512x512xbf16>, vector<128x512xf32> -> vector<128x512xf32>
    %c0_3 = arith.constant 0 : index
    %c0_4 = arith.constant 0 : index
    %3 = vector.load %arg4[%c0_3, %c0_4] : memref<128x512xf32, #tpu.memory_space<vmem>>, vector<128x512xf32>
    tpu.vector_store %arg4[%c0_3, %c0_4], %2 {strides = array<i32>} : memref<128x512xf32, #tpu.memory_space<vmem>>, vector<128x512xf32>,
    return
  }
  func.func @transform_0(%arg0: i32, %arg1: i32) -> (i32, i32) {
    %c0_i32 = arith.constant 0 : i32
    %c0_i32_0 = arith.constant 0 : i32
    return %arg0, %c0_i32 : i32, i32
  }
  func.func @transform_1(%arg0: i32, %arg1: i32) -> (i32, i32) {
    %c0_i32 = arith.constant 0 : i32
    %c0_i32_0 = arith.constant 0 : i32
    return %c0_i32, %arg1 : i32, i32
  }
  func.func @transform_2(%arg0: i32, %arg1: i32) -> (i32, i32) {
    %c0_i32 = arith.constant 0 : i32
    return %arg0, %arg1 : i32, i32
  }
}

</mosaic_0001>

<bundles_post_ra>
// kernel: tpu_custom_call.1
= control target key start
LH: loop header
LB: loop body
LE: loop exit
PB: predicated region body
PF: predicated region fallthrough
CT: control target
= control target key end

     0   :  { %7 = vsyncpa [#allocation3], 0  ;;  %s2135_s0 = inlined_call_operand.hbm [shape: bf16[128,512], index: 0, kind: input, shape index: {}]   ;;  %s2136_s1 = inlined_call_operand.hbm [shape: bf16[512,512], index: 1, kind: input, shape index: {}]   ;;  %s2137_s2 = inlined_call_operand.hbm [shape: f32[128,512], index: 2, kind: output, shape index: {}]  }
   0x1   :  { %8 = vsyncpa [#allocation6], 0 }
   0x2   :  { %9 = vsyncpa [#allocation4], 0  ;;  %s2077_s9 = smov [#allocation2]   ;;  %s2005_s13 = scalar_lea.hbm %s2135_s0, 4096 }
   0x3   :  { %s15_s10 = sshll.u32 %s2077_s9, 4  ;;  %p2006_p0 = scmp.ne.s32.totalorder %s2135_s0, %s2005_s13  ;;  %s16_s10 = int_to_ptr.vmem [resolvable:$true] %s15_s10 }
   0x4   :  { %p2009_p1 = scmp.lt.u32.totalorder %s2005_s13, %s2135_s0 }
   0x6   :  { %p2011_p2 = pnand %p2009_p1, %p2006_p0 }
   0x8   :  { %2014 = shalt.err (!%p2011_p2)
}
   0x9   :  { %s2015_s18 = scalar_lea.vmem %s16_s10, 4096  ;;  %p2020_p4 = scmp.lt.s32.totalorder %s16_s10, %s16_s10 }
   0xa   :  { %p2016_p3 = scmp.ne.s32.totalorder %s16_s10, %s2015_s18  ;;  %p2021_p5 = scmp.lt.s32.totalorder %s2015_s18, %s2015_s18 }
   0xc   :  { %p2022_p6 = por %p2021_p5, %p2020_p4 }
   0xe   :  { %p2023_p7 = pnand %p2022_p6, %p2016_p3 }
  0x10   :  { %2026 = shalt.err (!%p2023_p7)
}
  0x11   :  { %s2078_s19 = smov 256   ;;  %s2079_s20 = smov 16  }
  0x12   :  { %21 = dma.hbm_to_vmem [thread:$0]  %s2135_s0, 4096, %s16_s10, [#allocation3], %s2078_s19, %s2078_s19, %s2079_s20  }
  0x13   :  { %s2080_s23 = smov [#allocation5]   ;;  %s2027_s27 = scalar_lea.hbm %s2136_s1, 16384 }
  0x14   :  { %s27_s24 = sshll.u32 %s2080_s23, 4  ;;  %p2028_p8 = scmp.ne.s32.totalorder %s2136_s1, %s2027_s27  ;;  %s28_s24 = int_to_ptr.vmem [resolvable:$true] %s27_s24 }
  0x15   :  { %p2031_p9 = scmp.lt.u32.totalorder %s2027_s27, %s2136_s1 }
  0x17   :  { %p2033_p10 = pnand %p2031_p9, %p2028_p8 }
  0x19   :  { %2036 = shalt.err (!%p2033_p10)
}
  0x1a   :  { %s2037_s4 = scalar_lea.vmem %s28_s24, 16384  ;;  %p2042_p12 = scmp.lt.s32.totalorder %s28_s24, %s28_s24 }
  0x1b   :  { %p2038_p11 = scmp.ne.s32.totalorder %s28_s24, %s2037_s4  ;;  %p2043_p13 = scmp.lt.s32.totalorder %s2037_s4, %s2037_s4 }
  0x1d   :  { %p2044_p0 = por %p2043_p13, %p2042_p12 }
  0x1f   :  { %p2045_p1 = pnand %p2044_p0, %p2038_p11 }
  0x21   :  { %2048 = shalt.err (!%p2045_p1)
}
  0x22   :  { %33 = dma.hbm_to_vmem [thread:$0]  %s2136_s1, 16384, %s28_s24, [#allocation6], %s2078_s19, %s2078_s19, %s2079_s20  }
  0x23   :  { %2071 = dma.done.wait [#allocation3], 4096  }
  0x24   :  { %2072 = vsyncadd [#allocation3], 4294963200 }
  0x25   :  { %2073 = dma.done.wait [#allocation6], 16384  }
  0x26   :  { %2074 = vsyncadd [#allocation6], 4294950912  ;;  %v1765_v0 = vld [vmem:[#allocation5 + $0x4] ss:$16 sps:$4 sm:$0xff]   ;;  %v1767_v1 = vld [vmem:[#allocation5 + $0xc] ss:$16 sps:$4 sm:$0xff]  }
  0x27   :  { %1000 = vmatprep.subr.bf16.mxu0 %v1765_v0  ;;  %v1769_v2 = vld [vmem:[#allocation5] ss:$16 sps:$4 sm:$0xff]   ;;  %v1770_v3 = vld [vmem:[#allocation5 + $0x8] ss:$16 sps:$4 sm:$0xff]   ;;  %1226 = vmatprep.subr.bf16.mxu1 %v1767_v1  ;;  %v1771_v4 = vld [vmem:[#allocation5 + $0x24] ss:$16 sps:$4 sm:$0xff]  }
  0x28   :  { %1001 = vmatpush1.bf16.msra.mxu0 %v1769_v2  ;;  %1227 = vmatpush1.bf16.msra.mxu1 %v1770_v3  ;;  %v1773_v5 = vld [vmem:[#allocation5 + $0x2c] ss:$16 sps:$4 sm:$0xff]   ;;  %v1775_v6 = vld [vmem:[#allocation5 + $0x20] ss:$16 sps:$4 sm:$0xff]   ;;  %v1776_v7 = vld [vmem:[#allocation5 + $0x28] ss:$16 sps:$4 sm:$0xff]  }
  0x29   :  { %1002 = vmatprep.subr.bf16.mxu0 %v1771_v4  ;;  %1228 = vmatprep.subr.bf16.mxu1 %v1773_v5  ;;  %v1777_v8 = vld [vmem:[#allocation5 + $0x44] ss:$16 sps:$4 sm:$0xff]   ;;  %v1779_v9 = vld [vmem:[#allocation5 + $0x4c] ss:$16 sps:$4 sm:$0xff]   ;;  %v1781_v10 = vld [vmem:[#allocation5 + $0x40] ss:$16 sps:$4 sm:$0xff]  }
  0x2a   :  { %v1782_v11 = vld [vmem:[#allocation5 + $0x48] ss:$16 sps:$4 sm:$0xff]   ;;  %v1783_v12 = vld [vmem:[#allocation5 + $0x64] ss:$16 sps:$4 sm:$0xff]   ;;  %v1785_v13 = vld [vmem:[#allocation5 + $0x6c] ss:$16 sps:$4 sm:$0xff]  }
  0x2b   :  { %v1787_v14 = vld [vmem:[#allocation5 + $0x60] ss:$16 sps:$4 sm:$0xff]   ;;  %v1788_v15 = vld [vmem:[#allocation5 + $0x68] ss:$16 sps:$4 sm:$0xff]   ;;  %v1789_v16 = vld [vmem:[#allocation5 + $0x84] ss:$16 sps:$4 sm:$0xff]  }
  0x2c   :  { %1003 = vmatpush1.bf16.msra.mxu0 %v1775_v6  ;;  %1229 = vmatpush1.bf16.msra.mxu1 %v1776_v7  ;;  %v1791_v17 = vld [vmem:[#allocation5 + $0x8c] ss:$16 sps:$4 sm:$0xff]   ;;  %v1793_v18 = vld [vmem:[#allocation5 + $0x80] ss:$16 sps:$4 sm:$0xff]   ;;  %v1794_v19 = vld [vmem:[#allocation5 + $0x88] ss:$16 sps:$4 sm:$0xff]  }
  0x2d   :  { %1004 = vmatprep.subr.bf16.mxu0 %v1777_v8  ;;  %1230 = vmatprep.subr.bf16.mxu1 %v1779_v9  ;;  %v1795_v20 = vld [vmem:[#allocation5 + $0xa4] ss:$16 sps:$4 sm:$0xff]   ;;  %v1797_v21 = vld [vmem:[#allocation5 + $0xac] ss:$16 sps:$4 sm:$0xff]   ;;  %v1799_v22 = vld [vmem:[#allocation5 + $0xa0] ss:$16 sps:$4 sm:$0xff]  }
  0x2e   :  { %v1800_v23 = vld [vmem:[#allocation5 + $0xa8] ss:$16 sps:$4 sm:$0xff]   ;;  %v1801_v24 = vld [vmem:[#allocation5 + $0xc4] ss:$16 sps:$4 sm:$0xff]   ;;  %v1803_v25 = vld [vmem:[#allocation5 + $0xcc] ss:$16 sps:$4 sm:$0xff]  }
  0x2f   :  { %v1805_v26 = vld [vmem:[#allocation5 + $0xc0] ss:$16 sps:$4 sm:$0xff]   ;;  %v1806_v27 = vld [vmem:[#allocation5 + $0xc8] ss:$16 sps:$4 sm:$0xff]   ;;  %v1807_v28 = vld [vmem:[#allocation5 + $0xe4] ss:$16 sps:$4 sm:$0xff]  }
  0x30   :  { %1005 = vmatpush1.bf16.msra.mxu0 %v1781_v10  ;;  %1231 = vmatpush1.bf16.msra.mxu1 %v1782_v11  ;;  %v1809_v29 = vld [vmem:[#allocation5 + $0xec] ss:$16 sps:$4 sm:$0xff]   ;;  %v1811_v30 = vld [vmem:[#allocation5 + $0xe0] ss:$16 sps:$4 sm:$0xff]   ;;  %v1812_v31 = vld [vmem:[#allocation5 + $0xe8] ss:$16 sps:$4 sm:$0xff]  }
  0x31   :  { %1006 = vmatprep.subr.bf16.mxu0 %v1783_v12  ;;  %1232 = vmatprep.subr.bf16.mxu1 %v1785_v13  ;;  %v1813_v32 = vld [vmem:[#allocation5 + $0x104] ss:$16 sps:$4 sm:$0xff]   ;;  %v1815_v33 = vld [vmem:[#allocation5 + $0x10c] ss:$16 sps:$4 sm:$0xff]   ;;  %v1817_v34 = vld [vmem:[#allocation5 + $0x100] ss:$16 sps:$4 sm:$0xff]  }
  0x32   :  { %v1818_v35 = vld [vmem:[#allocation5 + $0x108] ss:$16 sps:$4 sm:$0xff]   ;;  %v1819_v36 = vld [vmem:[#allocation5 + $0x124] ss:$16 sps:$4 sm:$0xff]   ;;  %v1821_v37 = vld [vmem:[#allocation5 + $0x12c] ss:$16 sps:$4 sm:$0xff]  }
  0x33   :  { %v1823_v38 = vld [vmem:[#allocation5 + $0x120] ss:$16 sps:$4 sm:$0xff]   ;;  %v1824_v39 = vld [vmem:[#allocation5 + $0x128] ss:$16 sps:$4 sm:$0xff]   ;;  %v1825_v40 = vld [vmem:[#allocation5 + $0x144] ss:$16 sps:$4 sm:$0xff]  }
  0x34   :  { %1007 = vmatpush1.bf16.msra.mxu0 %v1787_v14  ;;  %1233 = vmatpush1.bf16.msra.mxu1 %v1788_v15  ;;  %v1827_v41 = vld [vmem:[#allocation5 + $0x14c] ss:$16 sps:$4 sm:$0xff]   ;;  %v1829_v42 = vld [vmem:[#allocation5 + $0x140] ss:$16 sps:$4 sm:$0xff]   ;;  %v1830_v43 = vld [vmem:[#allocation5 + $0x148] ss:$16 sps:$4 sm:$0xff]  }
  0x35   :  { %1008 = vmatprep.subr.bf16.mxu0 %v1789_v16  ;;  %1234 = vmatprep.subr.bf16.mxu1 %v1791_v17  ;;  %v1831_v44 = vld [vmem:[#allocation5 + $0x164] ss:$16 sps:$4 sm:$0xff]   ;;  %v1833_v45 = vld [vmem:[#allocation5 + $0x16c] ss:$16 sps:$4 sm:$0xff]   ;;  %v1835_v46 = vld [vmem:[#allocation5 + $0x160] ss:$16 sps:$4 sm:$0xff]  }
  0x36   :  { %v1836_v47 = vld [vmem:[#allocation5 + $0x168] ss:$16 sps:$4 sm:$0xff]   ;;  %v1863_v48 = vld [vmem:[#allocation2 + $0x4] ss:$16 sps:$4 sm:$0xff]   ;;  %v1839_v50 = vld [vmem:[#allocation5 + $0x18c] ss:$16 sps:$4 sm:$0xff]  }
  0x37   :  { %v1837_v49 = vld [vmem:[#allocation5 + $0x184] ss:$16 sps:$4 sm:$0xff]   ;;  %1032 = vmatprep.mubr.bf16.mxu0 %v1863_v48  ;;  %1258 = vmatprep.mubr.bf16.mxu1 %v1863_v48  ;;  %v1841_v51 = vld [vmem:[#allocation5 + $0x180] ss:$16 sps:$4 sm:$0xff]   ;;  %v1842_v52 = vld [vmem:[#allocation5 + $0x188] ss:$16 sps:$4 sm:$0xff]  }
  0x38   :  { %1009 = vmatpush1.bf16.msra.mxu0 %v1793_v18  ;;  %1235 = vmatpush1.bf16.msra.mxu1 %v1794_v19  ;;  %v1843_v53 = vld [vmem:[#allocation5 + $0x1a4] ss:$16 sps:$4 sm:$0xff]   ;;  %v1845_v54 = vld [vmem:[#allocation5 + $0x1ac] ss:$16 sps:$4 sm:$0xff]   ;;  %v1847_v55 = vld [vmem:[#allocation5 + $0x1a0] ss:$16 sps:$4 sm:$0xff]  }
  0x39   :  { %1010 = vmatprep.subr.bf16.mxu0 %v1795_v20  ;;  %1236 = vmatprep.subr.bf16.mxu1 %v1797_v21  ;;  %v1848_v56 = vld [vmem:[#allocation5 + $0x1a8] ss:$16 sps:$4 sm:$0xff]   ;;  %v1849_v57 = vld [vmem:[#allocation5 + $0x1c4] ss:$16 sps:$4 sm:$0xff]   ;;  %v1851_v58 = vld [vmem:[#allocation5 + $0x1cc] ss:$16 sps:$4 sm:$0xff]  }
  0x3a   :  { %v1853_v59 = vld [vmem:[#allocation5 + $0x1c0] ss:$16 sps:$4 sm:$0xff]   ;;  %v1854_v60 = vld [vmem:[#allocation5 + $0x1c8] ss:$16 sps:$4 sm:$0xff]   ;;  %v1855_v61 = vld [vmem:[#allocation5 + $0x1e4] ss:$16 sps:$4 sm:$0xff]  }
  0x3b   :  { %v1857_v62 = vld [vmem:[#allocation5 + $0x1ec] ss:$16 sps:$4 sm:$0xff]   ;;  %v1859_v63 = vld [vmem:[#allocation5 + $0x1e0] ss:$16 sps:$4 sm:$0xff]   ;;  %v1860_v0 = vld [vmem:[#allocation5 + $0x1e8] ss:$16 sps:$4 sm:$0xff]  }
  0x3c   :  { %1011 = vmatpush1.bf16.msra.mxu0 %v1799_v22  ;;  %1237 = vmatpush1.bf16.msra.mxu1 %v1800_v23  ;;  %v1866_v1 = vld [vmem:[#allocation5 + $0x204] ss:$16 sps:$4 sm:$0xff]   ;;  %v1869_v2 = vld [vmem:[#allocation5 + $0x20c] ss:$16 sps:$4 sm:$0xff]   ;;  %v1861_v3 = vld [vmem:[#allocation2] ss:$16 sps:$4 sm:$0xff]  }
  0x3d   :  { %1012 = vmatprep.subr.bf16.mxu0 %v1801_v24  ;;  %1238 = vmatprep.subr.bf16.mxu1 %v1803_v25  ;;  %v1864_v4 = vld [vmem:[#allocation5 + $0x200] ss:$16 sps:$4 sm:$0xff]   ;;  %v1867_v5 = vld [vmem:[#allocation5 + $0x208] ss:$16 sps:$4 sm:$0xff]   ;;  %v1872_v6 = vld [vmem:[#allocation5 + $0x224] ss:$16 sps:$4 sm:$0xff]  }
  0x3e   :  { %v1875_v7 = vld [vmem:[#allocation5 + $0x22c] ss:$16 sps:$4 sm:$0xff]   ;;  %v1876_v8 = vld [vmem:[#allocation2 + $0x24] ss:$16 sps:$4 sm:$0xff]   ;;  %v1870_v9 = vld [vmem:[#allocation5 + $0x220] ss:$16 sps:$4 sm:$0xff]  }
  0x3f   :  { %v1873_v10 = vld [vmem:[#allocation5 + $0x228] ss:$16 sps:$4 sm:$0xff]   ;;  %v1881_v11 = vld [vmem:[#allocation5 + $0x244] ss:$16 sps:$4 sm:$0xff]   ;;  %v1884_v12 = vld [vmem:[#allocation5 + $0x24c] ss:$16 sps:$4 sm:$0xff]  }
  0x40   :  { %1013 = vmatpush1.bf16.msra.mxu0 %v1805_v26  ;;  %1239 = vmatpush1.bf16.msra.mxu1 %v1806_v27  ;;  %v1878_v13 = vld [vmem:[#allocation2 + $0x20] ss:$16 sps:$4 sm:$0xff]   ;;  %v1882_v15 = vld [vmem:[#allocation5 + $0x248] ss:$16 sps:$4 sm:$0xff]   ;;  %v1887_v16 = vld [vmem:[#allocation5 + $0x264] ss:$16 sps:$4 sm:$0xff]  }
  0x41   :  { %1014 = vmatprep.subr.bf16.mxu0 %v1807_v28  ;;  %1240 = vmatprep.subr.bf16.mxu1 %v1809_v29  ;;  %v1879_v14 = vld [vmem:[#allocation5 + $0x240] ss:$16 sps:$4 sm:$0xff]   ;;  %v1890_v17 = vld [vmem:[#allocation5 + $0x26c] ss:$16 sps:$4 sm:$0xff]   ;;  %v1891_v18 = vld [vmem:[#allocation2 + $0x44] ss:$16 sps:$4 sm:$0xff]  }
  0x42   :  { %v1885_v19 = vld [vmem:[#allocation5 + $0x260] ss:$16 sps:$4 sm:$0xff]   ;;  %v1888_v20 = vld [vmem:[#allocation5 + $0x268] ss:$16 sps:$4 sm:$0xff]   ;;  %v1896_v21 = vld [vmem:[#allocation5 + $0x284] ss:$16 sps:$4 sm:$0xff]  }
  0x43   :  { %v1899_v22 = vld [vmem:[#allocation5 + $0x28c] ss:$16 sps:$4 sm:$0xff]   ;;  %v1893_v23 = vld [vmem:[#allocation2 + $0x40] ss:$16 sps:$4 sm:$0xff]   ;;  %v1897_v25 = vld [vmem:[#allocation5 + $0x288] ss:$16 sps:$4 sm:$0xff]  }
  0x44   :  { %1015 = vmatpush1.bf16.msra.mxu0 %v1811_v30  ;;  %1241 = vmatpush1.bf16.msra.mxu1 %v1812_v31  ;;  %v1894_v24 = vld [vmem:[#allocation5 + $0x280] ss:$16 sps:$4 sm:$0xff]   ;;  %v1902_v26 = vld [vmem:[#allocation5 + $0x2a4] ss:$16 sps:$4 sm:$0xff]   ;;  %v1905_v27 = vld [vmem:[#allocation5 + $0x2ac] ss:$16 sps:$4 sm:$0xff]  }
  0x45   :  { %1016 = vmatprep.subr.bf16.mxu0 %v1813_v32  ;;  %1242 = vmatprep.subr.bf16.mxu1 %v1815_v33  ;;  %v1906_v28 = vld [vmem:[#allocation2 + $0x64] ss:$16 sps:$4 sm:$0xff]   ;;  %v1900_v29 = vld [vmem:[#allocation5 + $0x2a0] ss:$16 sps:$4 sm:$0xff]   ;;  %v1903_v30 = vld [vmem:[#allocation5 + $0x2a8] ss:$16 sps:$4 sm:$0xff]  }
  0x46   :  { %v1911_v31 = vld [vmem:[#allocation5 + $0x2c4] ss:$16 sps:$4 sm:$0xff]   ;;  %v1914_v32 = vld [vmem:[#allocation5 + $0x2cc] ss:$16 sps:$4 sm:$0xff]   ;;  %v1908_v33 = vld [vmem:[#allocation2 + $0x60] ss:$16 sps:$4 sm:$0xff]  }
  0x47   :  { %v1936_v48 = vld [vmem:[#allocation2 + $0xa4] ss:$16 sps:$4 sm:$0xff]   ;;  %s2081_s1 = smov [#allocation7]  }
  0x48   :  { %1017 = vmatpush1.bf16.msra.mxu0 %v1817_v34  ;;  %1243 = vmatpush1.bf16.msra.mxu1 %v1818_v35  ;;  %v1909_v34 = vld [vmem:[#allocation5 + $0x2c0] ss:$16 sps:$4 sm:$0xff]   ;;  %v1912_v35 = vld [vmem:[#allocation5 + $0x2c8] ss:$16 sps:$4 sm:$0xff]   ;;  %s1521_s6 = sshll.u32 %s2081_s1, 4  ;;  %s1522_s6 = int_to_ptr.vmem [resolvable:$true] %s1521_s6 }
  0x49   :  { %1018 = vmatprep.subr.bf16.mxu0 %v1819_v36  ;;  %1244 = vmatprep.subr.bf16.mxu1 %v1821_v37  ;;  %v1917_v36 = vld [vmem:[#allocation5 + $0x2e4] ss:$16 sps:$4 sm:$0xff]   ;;  %v1920_v37 = vld [vmem:[#allocation5 + $0x2ec] ss:$16 sps:$4 sm:$0xff]   ;;  %s2049_s7 = scalar_lea.vmem %s1522_s6, 8192  ;;  %p2054_p3 = scmp.lt.s32.totalorder %s1522_s6, %s1522_s6 }
  0x4a   :  { %p2050_p2 = scmp.ne.s32.totalorder %s1522_s6, %s2049_s7  ;;  %p2055_p4 = scmp.lt.s32.totalorder %s2049_s7, %s2049_s7 }
  0x4c   :  { %1019 = vmatpush1.bf16.msra.mxu0 %v1823_v38  ;;  %1245 = vmatpush1.bf16.msra.mxu1 %v1824_v39  ;;  %v1921_v38 = vld [vmem:[#allocation2 + $0x84] ss:$16 sps:$4 sm:$0xff]   ;;  %v1915_v39 = vld [vmem:[#allocation5 + $0x2e0] ss:$16 sps:$4 sm:$0xff]   ;;  %p2056_p5 = por %p2055_p4, %p2054_p3 }
  0x4d   :  { %1020 = vmatprep.subr.bf16.mxu0 %v1825_v40  ;;  %1246 = vmatprep.subr.bf16.mxu1 %v1827_v41  ;;  %v1918_v40 = vld [vmem:[#allocation5 + $0x2e8] ss:$16 sps:$4 sm:$0xff]   ;;  %v1926_v41 = vld [vmem:[#allocation5 + $0x304] ss:$16 sps:$4 sm:$0xff]  }
  0x4e   :  { %p2057_p6 = pnand %p2056_p5, %p2050_p2 }
  0x50   :  { %1021 = vmatpush1.bf16.msra.mxu0 %v1829_v42  ;;  %1247 = vmatpush1.bf16.msra.mxu1 %v1830_v43  ;;  %v1929_v42 = vld [vmem:[#allocation5 + $0x30c] ss:$16 sps:$4 sm:$0xff]   ;;  %v1923_v43 = vld [vmem:[#allocation2 + $0x80] ss:$16 sps:$4 sm:$0xff]  }
  0x51   :  { %1022 = vmatprep.subr.bf16.mxu0 %v1831_v44  ;;  %1248 = vmatprep.subr.bf16.mxu1 %v1833_v45  ;;  %v1924_v44 = vld [vmem:[#allocation5 + $0x300] ss:$16 sps:$4 sm:$0xff]   ;;  %v1927_v45 = vld [vmem:[#allocation5 + $0x308] ss:$16 sps:$4 sm:$0xff]  }
  0x54   :  { %1023 = vmatpush1.bf16.msra.mxu0 %v1835_v46  ;;  %1249 = vmatpush1.bf16.msra.mxu1 %v1836_v47  ;;  %v1932_v46 = vld [vmem:[#allocation5 + $0x324] ss:$16 sps:$4 sm:$0xff]   ;;  %v1935_v47 = vld [vmem:[#allocation5 + $0x32c] ss:$16 sps:$4 sm:$0xff]  }
  0x55   :  { %1024 = vmatprep.subr.bf16.mxu0 %v1837_v49  ;;  %1250 = vmatprep.subr.bf16.mxu1 %v1839_v50  ;;  %v1930_v49 = vld [vmem:[#allocation5 + $0x320] ss:$16 sps:$4 sm:$0xff]   ;;  %v1933_v50 = vld [vmem:[#allocation5 + $0x328] ss:$16 sps:$4 sm:$0xff]  }
  0x58   :  { %1025 = vmatpush1.bf16.msra.mxu0 %v1841_v51  ;;  %1251 = vmatpush1.bf16.msra.mxu1 %v1842_v52  ;;  %v1941_v51 = vld [vmem:[#allocation5 + $0x344] ss:$16 sps:$4 sm:$0xff]   ;;  %v1944_v52 = vld [vmem:[#allocation5 + $0x34c] ss:$16 sps:$4 sm:$0xff]  }
  0x59   :  { %1026 = vmatprep.subr.bf16.mxu0 %v1843_v53  ;;  %1252 = vmatprep.subr.bf16.mxu1 %v1845_v54  ;;  %v1938_v53 = vld [vmem:[#allocation2 + $0xa0] ss:$16 sps:$4 sm:$0xff]  }
  0x5a   :  { %v1939_v54 = vld [vmem:[#allocation5 + $0x340] ss:$16 sps:$4 sm:$0xff]  }
  0x5c   :  { %1027 = vmatpush1.bf16.msra.mxu0 %v1847_v55  ;;  %1253 = vmatpush1.bf16.msra.mxu1 %v1848_v56  ;;  %v1942_v55 = vld [vmem:[#allocation5 + $0x348] ss:$16 sps:$4 sm:$0xff]   ;;  %v1947_v56 = vld [vmem:[#allocation5 + $0x364] ss:$16 sps:$4 sm:$0xff]  }
  0x5d   :  { %1028 = vmatprep.subr.bf16.mxu0 %v1849_v57  ;;  %1254 = vmatprep.subr.bf16.mxu1 %v1851_v58  ;;  %v1950_v57 = vld [vmem:[#allocation5 + $0x36c] ss:$16 sps:$4 sm:$0xff]   ;;  %v1951_v58 = vld [vmem:[#allocation2 + $0xc4] ss:$16 sps:$4 sm:$0xff]  }
  0x60   :  { %1029 = vmatpush1.bf16.msra.mxu0 %v1853_v59  ;;  %1255 = vmatpush1.bf16.msra.mxu1 %v1854_v60  ;;  %v1945_v59 = vld [vmem:[#allocation5 + $0x360] ss:$16 sps:$4 sm:$0xff]   ;;  %v1948_v60 = vld [vmem:[#allocation5 + $0x368] ss:$16 sps:$4 sm:$0xff]  }
  0x61   :  { %1030 = vmatprep.subr.bf16.mxu0 %v1855_v61  ;;  %1256 = vmatprep.subr.bf16.mxu1 %v1857_v62  ;;  %v1956_v61 = vld [vmem:[#allocation5 + $0x384] ss:$16 sps:$4 sm:$0xff]   ;;  %v1959_v62 = vld [vmem:[#allocation5 + $0x38c] ss:$16 sps:$4 sm:$0xff]  }
  0x64   :  { %1031 = vmatpush1.bf16.msra.mxu0 %v1859_v63  ;;  %1257 = vmatpush1.bf16.msra.mxu1 %v1860_v0  ;;  %v1953_v63 = vld [vmem:[#allocation2 + $0xc0] ss:$16 sps:$4 sm:$0xff]  }
  0x65   :  { %1113 = vmatprep.subr.bf16.mxu0 %v1866_v1  ;;  %1339 = vmatprep.subr.bf16.mxu1 %v1869_v2  ;;  %v1954_v0 = vld [vmem:[#allocation5 + $0x380] ss:$16 sps:$4 sm:$0xff]   ;;  %v1957_v1 = vld [vmem:[#allocation5 + $0x388] ss:$16 sps:$4 sm:$0xff]   ;;  %v1962_v2 = vld [vmem:[#allocation5 + $0x3a4] ss:$16 sps:$4 sm:$0xff]  }
  0x67   :  { %1033 = vmatmul.mubr.bf16.vlgmr.msra.gmra.mrb[0].mxu0 %v1861_v3  ;;  %1259 = vmatmul.mubr.bf16.vlgmr.msra.gmra.mrb[0].mxu1 %v1861_v3  ;;  %v1965_v3 = vld [vmem:[#allocation5 + $0x3ac] ss:$16 sps:$4 sm:$0xff]  }
  0x68   :  { %1114 = vmatpush1.bf16.msra.mxu0 %v1864_v4  ;;  %1340 = vmatpush1.bf16.msra.mxu1 %v1867_v5  ;;  %v1966_v4 = vld [vmem:[#allocation2 + $0xe4] ss:$16 sps:$4 sm:$0xff]   ;;  %v1960_v5 = vld [vmem:[#allocation5 + $0x3a0] ss:$16 sps:$4 sm:$0xff]  }
  0x69   :  { %1115 = vmatprep.subr.bf16.mxu0 %v1872_v6  ;;  %1341 = vmatprep.subr.bf16.mxu1 %v1875_v7  ;;  %v1963_v6 = vld [vmem:[#allocation5 + $0x3a8] ss:$16 sps:$4 sm:$0xff]   ;;  %v1971_v7 = vld [vmem:[#allocation5 + $0x3c4] ss:$16 sps:$4 sm:$0xff]  }
  0x6a   :  { %1042 = vmatprep.mubr.bf16.mxu0 %v1876_v8  ;;  %1268 = vmatprep.mubr.bf16.mxu1 %v1876_v8  ;;  %v1974_v8 = vld [vmem:[#allocation5 + $0x3cc] ss:$16 sps:$4 sm:$0xff]  }
  0x6c   :  { %1116 = vmatpush1.bf16.msra.mxu0 %v1870_v9  ;;  %1342 = vmatpush1.bf16.msra.mxu1 %v1873_v10  ;;  %v1968_v9 = vld [vmem:[#allocation2 + $0xe0] ss:$16 sps:$4 sm:$0xff]  }
  0x6d   :  { %1117 = vmatprep.subr.bf16.mxu0 %v1881_v11  ;;  %1343 = vmatprep.subr.bf16.mxu1 %v1884_v12  ;;  %v1969_v10 = vld [vmem:[#allocation5 + $0x3c0] ss:$16 sps:$4 sm:$0xff]   ;;  %v1972_v11 = vld [vmem:[#allocation5 + $0x3c8] ss:$16 sps:$4 sm:$0xff]   ;;  %v1977_v12 = vld [vmem:[#allocation5 + $0x3e4] ss:$16 sps:$4 sm:$0xff]  }
  0x6f   :  { %1043 = vmatmul.mubr.bf16.gmra.mrb[4].mxu0 %v1878_v13  ;;  %1269 = vmatmul.mubr.bf16.gmra.mrb[4].mxu1 %v1878_v13  ;;  %v1980_v13 = vld [vmem:[#allocation5 + $0x3ec] ss:$16 sps:$4 sm:$0xff]  }
  0x70   :  { %1118 = vmatpush1.bf16.msra.mxu0 %v1879_v14  ;;  %1344 = vmatpush1.bf16.msra.mxu1 %v1882_v15  ;;  %v1983_v14 = vld [vmem:[#allocation2 + $0xc] ss:$16 sps:$4 sm:$0xff]   ;;  %v1975_v15 = vld [vmem:[#allocation5 + $0x3e0] ss:$16 sps:$4 sm:$0xff]  }
  0x71   :  { %1119 = vmatprep.subr.bf16.mxu0 %v1887_v16  ;;  %1345 = vmatprep.subr.bf16.mxu1 %v1890_v17  ;;  %v1978_v16 = vld [vmem:[#allocation5 + $0x3e8] ss:$16 sps:$4 sm:$0xff]  }
  0x72   :  { %1052 = vmatprep.mubr.bf16.mxu0 %v1891_v18  ;;  %1278 = vmatprep.mubr.bf16.mxu1 %v1891_v18  ;;  %v1981_v17 = vld [vmem:[#allocation2 + $0x8] ss:$16 sps:$4 sm:$0xff]   ;;  %v1984_v18 = vld [vmem:[#allocation2 + $0x2c] ss:$16 sps:$4 sm:$0xff]  }
  0x74   :  { %1120 = vmatpush1.bf16.msra.mxu0 %v1885_v19  ;;  %1346 = vmatpush1.bf16.msra.mxu1 %v1888_v20  ;;  %v1986_v19 = vld [vmem:[#allocation2 + $0x28] ss:$16 sps:$4 sm:$0xff]   ;;  %v1987_v20 = vld [vmem:[#allocation2 + $0x4c] ss:$16 sps:$4 sm:$0xff]  }
  0x75   :  { %1121 = vmatprep.subr.bf16.mxu0 %v1896_v21  ;;  %1347 = vmatprep.subr.bf16.mxu1 %v1899_v22  ;;  %v1989_v21 = vld [vmem:[#allocation2 + $0x48] ss:$16 sps:$4 sm:$0xff]   ;;  %v1990_v22 = vld [vmem:[#allocation2 + $0x6c] ss:$16 sps:$4 sm:$0xff]  }
  0x77   :  { %1053 = vmatmul.mubr.bf16.gmra.mrb[8].mxu0 %v1893_v23  ;;  %1279 = vmatmul.mubr.bf16.gmra.mrb[8].mxu1 %v1893_v23  ;;  %v1992_v23 = vld [vmem:[#allocation2 + $0x68] ss:$16 sps:$4 sm:$0xff]  }
  0x78   :  { %1122 = vmatpush1.bf16.msra.mxu0 %v1894_v24  ;;  %1348 = vmatpush1.bf16.msra.mxu1 %v1897_v25  ;;  %v1993_v24 = vld [vmem:[#allocation2 + $0x8c] ss:$16 sps:$4 sm:$0xff]   ;;  %v1995_v25 = vld [vmem:[#allocation2 + $0x88] ss:$16 sps:$4 sm:$0xff]  }
  0x79   :  { %1123 = vmatprep.subr.bf16.mxu0 %v1902_v26  ;;  %1349 = vmatprep.subr.bf16.mxu1 %v1905_v27  ;;  %v1996_v26 = vld [vmem:[#allocation2 + $0xac] ss:$16 sps:$4 sm:$0xff]   ;;  %v1998_v27 = vld [vmem:[#allocation2 + $0xa8] ss:$16 sps:$4 sm:$0xff]  }
  0x7a   :  { %1062 = vmatprep.mubr.bf16.mxu0 %v1906_v28  ;;  %1288 = vmatprep.mubr.bf16.mxu1 %v1906_v28  ;;  %v1999_v28 = vld [vmem:[#allocation2 + $0xcc] ss:$16 sps:$4 sm:$0xff]  }
  0x7c   :  { %1124 = vmatpush1.bf16.msra.mxu0 %v1900_v29  ;;  %1350 = vmatpush1.bf16.msra.mxu1 %v1903_v30  ;;  %v2001_v29 = vld [vmem:[#allocation2 + $0xc8] ss:$16 sps:$4 sm:$0xff]   ;;  %v2002_v30 = vld [vmem:[#allocation2 + $0xec] ss:$16 sps:$4 sm:$0xff]  }
  0x7d   :  { %1125 = vmatprep.subr.bf16.mxu0 %v1911_v31  ;;  %1351 = vmatprep.subr.bf16.mxu1 %v1914_v32  ;;  %v2004_v31 = vld [vmem:[#allocation2 + $0xe8] ss:$16 sps:$4 sm:$0xff]  }
  0x7f   :  { %1063 = vmatmul.mubr.bf16.gmra.mrb[12].mxu0 %v1908_v33  ;;  %1289 = vmatmul.mubr.bf16.gmra.mrb[12].mxu1 %v1908_v33 }
  0x80   :  { %1126 = vmatpush1.bf16.msra.mxu0 %v1909_v34  ;;  %1352 = vmatpush1.bf16.msra.mxu1 %v1912_v35 }
  0x81   :  { %1127 = vmatprep.subr.bf16.mxu0 %v1917_v36  ;;  %1353 = vmatprep.subr.bf16.mxu1 %v1920_v37 }
  0x82   :  { %1072 = vmatprep.mubr.bf16.mxu0 %v1921_v38  ;;  %1298 = vmatprep.mubr.bf16.mxu1 %v1921_v38 }
  0x84   :  { %1128 = vmatpush1.bf16.msra.mxu0 %v1915_v39  ;;  %1354 = vmatpush1.bf16.msra.mxu1 %v1918_v40 }
  0x85   :  { %1129 = vmatprep.subr.bf16.mxu0 %v1926_v41  ;;  %1355 = vmatprep.subr.bf16.mxu1 %v1929_v42 }
  0x87   :  { %1073 = vmatmul.mubr.bf16.gmra.mrb[16].mxu0 %v1923_v43  ;;  %1299 = vmatmul.mubr.bf16.gmra.mrb[16].mxu1 %v1923_v43 }
  0x88   :  { %1130 = vmatpush1.bf16.msra.mxu0 %v1924_v44  ;;  %1356 = vmatpush1.bf16.msra.mxu1 %v1927_v45 }
  0x89   :  { %1131 = vmatprep.subr.bf16.mxu0 %v1932_v46  ;;  %1357 = vmatprep.subr.bf16.mxu1 %v1935_v47 }
  0x8a   :  { %1082 = vmatprep.mubr.bf16.mxu0 %v1936_v48  ;;  %1308 = vmatprep.mubr.bf16.mxu1 %v1936_v48 }
  0x8c   :  { %1132 = vmatpush1.bf16.msra.mxu0 %v1930_v49  ;;  %1358 = vmatpush1.bf16.msra.mxu1 %v1933_v50 }
  0x8d   :  { %1133 = vmatprep.subr.bf16.mxu0 %v1941_v51  ;;  %1359 = vmatprep.subr.bf16.mxu1 %v1944_v52 }
  0x8f   :  { %1083 = vmatmul.mubr.bf16.gmra.mrb[20].mxu0 %v1938_v53  ;;  %1309 = vmatmul.mubr.bf16.gmra.mrb[20].mxu1 %v1938_v53 }
  0x90   :  { %1134 = vmatpush1.bf16.msra.mxu0 %v1939_v54  ;;  %1360 = vmatpush1.bf16.msra.mxu1 %v1942_v55 }
  0x91   :  { %1135 = vmatprep.subr.bf16.mxu0 %v1947_v56  ;;  %1361 = vmatprep.subr.bf16.mxu1 %v1950_v57 }
  0x92   :  { %1092 = vmatprep.mubr.bf16.mxu0 %v1951_v58  ;;  %1318 = vmatprep.mubr.bf16.mxu1 %v1951_v58 }
  0x94   :  { %1136 = vmatpush1.bf16.msra.mxu0 %v1945_v59  ;;  %1362 = vmatpush1.bf16.msra.mxu1 %v1948_v60 }
  0x95   :  { %1137 = vmatprep.subr.bf16.mxu0 %v1956_v61  ;;  %1363 = vmatprep.subr.bf16.mxu1 %v1959_v62 }
  0x97   :  { %1093 = vmatmul.mubr.bf16.gmra.mrb[24].mxu0 %v1953_v63  ;;  %1319 = vmatmul.mubr.bf16.gmra.mrb[24].mxu1 %v1953_v63 }
  0x98   :  { %1138 = vmatpush1.bf16.msra.mxu0 %v1954_v0  ;;  %1364 = vmatpush1.bf16.msra.mxu1 %v1957_v1 }
  0x99   :  { %1139 = vmatprep.subr.bf16.mxu0 %v1962_v2  ;;  %1365 = vmatprep.subr.bf16.mxu1 %v1965_v3 }
  0x9a   :  { %1102 = vmatprep.mubr.bf16.mxu0 %v1966_v4  ;;  %1328 = vmatprep.mubr.bf16.mxu1 %v1966_v4 }
  0x9c   :  { %1140 = vmatpush1.bf16.msra.mxu0 %v1960_v5  ;;  %1366 = vmatpush1.bf16.msra.mxu1 %v1963_v6 }
  0x9d   :  { %1141 = vmatprep.subr.bf16.mxu0 %v1971_v7  ;;  %1367 = vmatprep.subr.bf16.mxu1 %v1974_v8 }
  0x9f   :  { %1103 = vmatmul.mubr.bf16.gmra.mrb[28].mxu0 %v1968_v9  ;;  %1329 = vmatmul.mubr.bf16.gmra.mrb[28].mxu1 %v1968_v9 }
  0xa0   :  { %1142 = vmatpush1.bf16.msra.mxu0 %v1969_v10  ;;  %1368 = vmatpush1.bf16.msra.mxu1 %v1972_v11 }
  0xa1   :  { %1143 = vmatprep.subr.bf16.mxu0 %v1977_v12  ;;  %1369 = vmatprep.subr.bf16.mxu1 %v1980_v13 }
  0xa2   :  { %1145 = vmatprep.mubr.bf16.mxu0 %v1983_v14  ;;  %1371 = vmatprep.mubr.bf16.mxu1 %v1983_v14 }
  0xa4   :  { %1144 = vmatpush1.bf16.msra.mxu0 %v1975_v15  ;;  %1370 = vmatpush1.bf16.msra.mxu1 %v1978_v16 }
  0xa7   :  { %1146 = vmatmul.mubr.bf16.vlgmr.msra.gmra.mrb[0].mxu0 %v1981_v17  ;;  %1372 = vmatmul.mubr.bf16.vlgmr.msra.gmra.mrb[0].mxu1 %v1981_v17 }
  0xa8   :  { %1155 = vmatprep.mubr.bf16.mxu0 %v1984_v18  ;;  %1381 = vmatprep.mubr.bf16.mxu1 %v1984_v18 }
  0xaf   :  { %1156 = vmatmul.mubr.bf16.gmra.mrb[4].mxu0 %v1986_v19  ;;  %1382 = vmatmul.mubr.bf16.gmra.mrb[4].mxu1 %v1986_v19 }
  0xb0   :  { %1165 = vmatprep.mubr.bf16.mxu0 %v1987_v20  ;;  %1391 = vmatprep.mubr.bf16.mxu1 %v1987_v20 }
  0xb7   :  { %1166 = vmatmul.mubr.bf16.gmra.mrb[8].mxu0 %v1989_v21  ;;  %1392 = vmatmul.mubr.bf16.gmra.mrb[8].mxu1 %v1989_v21 }
  0xb8   :  { %1175 = vmatprep.mubr.bf16.mxu0 %v1990_v22  ;;  %1401 = vmatprep.mubr.bf16.mxu1 %v1990_v22 }
  0xbf   :  { %1176 = vmatmul.mubr.bf16.gmra.mrb[12].mxu0 %v1992_v23  ;;  %1402 = vmatmul.mubr.bf16.gmra.mrb[12].mxu1 %v1992_v23 }
  0xc0   :  { %1185 = vmatprep.mubr.bf16.mxu0 %v1993_v24  ;;  %1411 = vmatprep.mubr.bf16.mxu1 %v1993_v24 }
  0xc7   :  { %1186 = vmatmul.mubr.bf16.gmra.mrb[16].mxu0 %v1995_v25  ;;  %1412 = vmatmul.mubr.bf16.gmra.mrb[16].mxu1 %v1995_v25 }
  0xc8   :  { %1195 = vmatprep.mubr.bf16.mxu0 %v1996_v26  ;;  %1421 = vmatprep.mubr.bf16.mxu1 %v1996_v26 }
  0xcf   :  { %1196 = vmatmul.mubr.bf16.gmra.mrb[20].mxu0 %v1998_v27  ;;  %1422 = vmatmul.mubr.bf16.gmra.mrb[20].mxu1 %v1998_v27 }
  0xd0   :  { %1205 = vmatprep.mubr.bf16.mxu0 %v1999_v28  ;;  %1431 = vmatprep.mubr.bf16.mxu1 %v1999_v28 }
  0xd7   :  { %1206 = vmatmul.mubr.bf16.gmra.mrb[24].mxu0 %v2001_v29  ;;  %1432 = vmatmul.mubr.bf16.gmra.mrb[24].mxu1 %v2001_v29 }
  0xd8   :  { %1215 = vmatprep.mubr.bf16.mxu0 %v2002_v30  ;;  %1441 = vmatprep.mubr.bf16.mxu1 %v2002_v30 }
  0xdf   :  { %1216 = vmatmul.mubr.bf16.gmra.mrb[28].mxu0 %v2004_v31  ;;  %1442 = vmatmul.mubr.bf16.gmra.mrb[28].mxu1 %v2004_v31 }
 0x17a   :  { %v1147_v32 = vpop.f32.mrb[0].mxu0  ;;  %v1373_v33 = vpop.f32.mrb[0].mxu1 }
 0x17b   :  { %1452 = vst [vmem:[#allocation7] sm:$0xff] %v1147_v32  ;;  %1454 = vst [vmem:[#allocation7 + $0x10] sm:$0xff] %v1373_v33  ;;  %v1149_v34 = vpop.f32.mrb[1].mxu0  ;;  %v1375_v35 = vpop.f32.mrb[1].mxu1 }
 0x17c   :  { %1453 = vst [vmem:[#allocation7 + $0x8] sm:$0xff] %v1149_v34  ;;  %1455 = vst [vmem:[#allocation7 + $0x18] sm:$0xff] %v1375_v35  ;;  %v1151_v36 = vpop.f32.mrb[2].mxu0  ;;  %v1377_v37 = vpop.f32.mrb[2].mxu1 }
 0x17d   :  { %1456 = vst [vmem:[#allocation7 + $0x20] sm:$0xff] %v1151_v36  ;;  %1458 = vst [vmem:[#allocation7 + $0x30] sm:$0xff] %v1377_v37  ;;  %v1153_v38 = vpop.f32.mrb[3].mxu0  ;;  %v1379_v39 = vpop.f32.mrb[3].mxu1 }
 0x17e   :  { %1457 = vst [vmem:[#allocation7 + $0x28] sm:$0xff] %v1153_v38  ;;  %1459 = vst [vmem:[#allocation7 + $0x38] sm:$0xff] %v1379_v39 }
 0x182   :  { %v1157_v40 = vpop.f32.mrb[4].mxu0  ;;  %v1383_v41 = vpop.f32.mrb[4].mxu1 }
 0x183   :  { %1460 = vst [vmem:[#allocation7 + $0x40] sm:$0xff] %v1157_v40  ;;  %1462 = vst [vmem:[#allocation7 + $0x50] sm:$0xff] %v1383_v41  ;;  %v1159_v42 = vpop.f32.mrb[5].mxu0  ;;  %v1385_v43 = vpop.f32.mrb[5].mxu1 }
 0x184   :  { %1461 = vst [vmem:[#allocation7 + $0x48] sm:$0xff] %v1159_v42  ;;  %1463 = vst [vmem:[#allocation7 + $0x58] sm:$0xff] %v1385_v43  ;;  %v1161_v44 = vpop.f32.mrb[6].mxu0  ;;  %v1387_v45 = vpop.f32.mrb[6].mxu1 }
 0x185   :  { %1464 = vst [vmem:[#allocation7 + $0x60] sm:$0xff] %v1161_v44  ;;  %1466 = vst [vmem:[#allocation7 + $0x70] sm:$0xff] %v1387_v45  ;;  %v1163_v46 = vpop.f32.mrb[7].mxu0  ;;  %v1389_v47 = vpop.f32.mrb[7].mxu1 }
 0x186   :  { %1465 = vst [vmem:[#allocation7 + $0x68] sm:$0xff] %v1163_v46  ;;  %1467 = vst [vmem:[#allocation7 + $0x78] sm:$0xff] %v1389_v47 }
 0x18a   :  { %v1167_v48 = vpop.f32.mrb[8].mxu0  ;;  %v1393_v49 = vpop.f32.mrb[8].mxu1 }
 0x18b   :  { %1468 = vst [vmem:[#allocation7 + $0x80] sm:$0xff] %v1167_v48  ;;  %1470 = vst [vmem:[#allocation7 + $0x90] sm:$0xff] %v1393_v49  ;;  %v1169_v50 = vpop.f32.mrb[9].mxu0  ;;  %v1395_v51 = vpop.f32.mrb[9].mxu1 }
 0x18c   :  { %1469 = vst [vmem:[#allocation7 + $0x88] sm:$0xff] %v1169_v50  ;;  %1471 = vst [vmem:[#allocation7 + $0x98] sm:$0xff] %v1395_v51  ;;  %v1171_v52 = vpop.f32.mrb[10].mxu0  ;;  %v1397_v53 = vpop.f32.mrb[10].mxu1 }
 0x18d   :  { %1472 = vst [vmem:[#allocation7 + $0xa0] sm:$0xff] %v1171_v52  ;;  %1474 = vst [vmem:[#allocation7 + $0xb0] sm:$0xff] %v1397_v53  ;;  %v1173_v54 = vpop.f32.mrb[11].mxu0  ;;  %v1399_v55 = vpop.f32.mrb[11].mxu1 }
 0x18e   :  { %1473 = vst [vmem:[#allocation7 + $0xa8] sm:$0xff] %v1173_v54  ;;  %1475 = vst [vmem:[#allocation7 + $0xb8] sm:$0xff] %v1399_v55 }
 0x192   :  { %v1177_v56 = vpop.f32.mrb[12].mxu0  ;;  %v1403_v57 = vpop.f32.mrb[12].mxu1 }
 0x193   :  { %1476 = vst [vmem:[#allocation7 + $0xc0] sm:$0xff] %v1177_v56  ;;  %1478 = vst [vmem:[#allocation7 + $0xd0] sm:$0xff] %v1403_v57  ;;  %v1179_v58 = vpop.f32.mrb[13].mxu0  ;;  %v1405_v59 = vpop.f32.mrb[13].mxu1 }
 0x194   :  { %1477 = vst [vmem:[#allocation7 + $0xc8] sm:$0xff] %v1179_v58  ;;  %1479 = vst [vmem:[#allocation7 + $0xd8] sm:$0xff] %v1405_v59  ;;  %v1181_v60 = vpop.f32.mrb[14].mxu0  ;;  %v1407_v61 = vpop.f32.mrb[14].mxu1 }
 0x195   :  { %1480 = vst [vmem:[#allocation7 + $0xe0] sm:$0xff] %v1181_v60  ;;  %1482 = vst [vmem:[#allocation7 + $0xf0] sm:$0xff] %v1407_v61  ;;  %v1183_v62 = vpop.f32.mrb[15].mxu0  ;;  %v1409_v63 = vpop.f32.mrb[15].mxu1 }
 0x196   :  { %1481 = vst [vmem:[#allocation7 + $0xe8] sm:$0xff] %v1183_v62  ;;  %1483 = vst [vmem:[#allocation7 + $0xf8] sm:$0xff] %v1409_v63 }
 0x19a   :  { %v1187_v0 = vpop.f32.mrb[16].mxu0  ;;  %v1413_v1 = vpop.f32.mrb[16].mxu1 }
 0x19b   :  { %1484 = vst [vmem:[#allocation7 + $0x100] sm:$0xff] %v1187_v0  ;;  %1486 = vst [vmem:[#allocation7 + $0x110] sm:$0xff] %v1413_v1  ;;  %v1189_v2 = vpop.f32.mrb[17].mxu0  ;;  %v1415_v3 = vpop.f32.mrb[17].mxu1 }
 0x19c   :  { %1485 = vst [vmem:[#allocation7 + $0x108] sm:$0xff] %v1189_v2  ;;  %1487 = vst [vmem:[#allocation7 + $0x118] sm:$0xff] %v1415_v3  ;;  %v1191_v4 = vpop.f32.mrb[18].mxu0  ;;  %v1417_v5 = vpop.f32.mrb[18].mxu1 }
 0x19d   :  { %1488 = vst [vmem:[#allocation7 + $0x120] sm:$0xff] %v1191_v4  ;;  %1490 = vst [vmem:[#allocation7 + $0x130] sm:$0xff] %v1417_v5  ;;  %v1193_v6 = vpop.f32.mrb[19].mxu0  ;;  %v1419_v7 = vpop.f32.mrb[19].mxu1 }
 0x19e   :  { %1489 = vst [vmem:[#allocation7 + $0x128] sm:$0xff] %v1193_v6  ;;  %1491 = vst [vmem:[#allocation7 + $0x138] sm:$0xff] %v1419_v7 }
 0x1a2   :  { %v1197_v8 = vpop.f32.mrb[20].mxu0  ;;  %v1423_v9 = vpop.f32.mrb[20].mxu1 }
 0x1a3   :  { %1492 = vst [vmem:[#allocation7 + $0x140] sm:$0xff] %v1197_v8  ;;  %1494 = vst [vmem:[#allocation7 + $0x150] sm:$0xff] %v1423_v9  ;;  %v1199_v10 = vpop.f32.mrb[21].mxu0  ;;  %v1425_v11 = vpop.f32.mrb[21].mxu1 }
 0x1a4   :  { %1493 = vst [vmem:[#allocation7 + $0x148] sm:$0xff] %v1199_v10  ;;  %1495 = vst [vmem:[#allocation7 + $0x158] sm:$0xff] %v1425_v11  ;;  %v1201_v12 = vpop.f32.mrb[22].mxu0  ;;  %v1427_v13 = vpop.f32.mrb[22].mxu1 }
 0x1a5   :  { %1496 = vst [vmem:[#allocation7 + $0x160] sm:$0xff] %v1201_v12  ;;  %1498 = vst [vmem:[#allocation7 + $0x170] sm:$0xff] %v1427_v13  ;;  %v1203_v14 = vpop.f32.mrb[23].mxu0  ;;  %v1429_v15 = vpop.f32.mrb[23].mxu1 }
 0x1a6   :  { %1497 = vst [vmem:[#allocation7 + $0x168] sm:$0xff] %v1203_v14  ;;  %1499 = vst [vmem:[#allocation7 + $0x178] sm:$0xff] %v1429_v15 }
 0x1aa   :  { %v1207_v16 = vpop.f32.mrb[24].mxu0  ;;  %v1433_v17 = vpop.f32.mrb[24].mxu1 }
 0x1ab   :  { %1500 = vst [vmem:[#allocation7 + $0x180] sm:$0xff] %v1207_v16  ;;  %1502 = vst [vmem:[#allocation7 + $0x190] sm:$0xff] %v1433_v17  ;;  %v1209_v18 = vpop.f32.mrb[25].mxu0  ;;  %v1435_v19 = vpop.f32.mrb[25].mxu1 }
 0x1ac   :  { %1501 = vst [vmem:[#allocation7 + $0x188] sm:$0xff] %v1209_v18  ;;  %1503 = vst [vmem:[#allocation7 + $0x198] sm:$0xff] %v1435_v19  ;;  %v1211_v20 = vpop.f32.mrb[26].mxu0  ;;  %v1437_v21 = vpop.f32.mrb[26].mxu1 }
 0x1ad   :  { %1504 = vst [vmem:[#allocation7 + $0x1a0] sm:$0xff] %v1211_v20  ;;  %1506 = vst [vmem:[#allocation7 + $0x1b0] sm:$0xff] %v1437_v21  ;;  %v1213_v22 = vpop.f32.mrb[27].mxu0  ;;  %v1439_v23 = vpop.f32.mrb[27].mxu1 }
 0x1ae   :  { %1505 = vst [vmem:[#allocation7 + $0x1a8] sm:$0xff] %v1213_v22  ;;  %1507 = vst [vmem:[#allocation7 + $0x1b8] sm:$0xff] %v1439_v23 }
 0x1b2   :  { %v1217_v24 = vpop.f32.mrb[28].mxu0  ;;  %v1443_v25 = vpop.f32.mrb[28].mxu1 }
 0x1b3   :  { %1508 = vst [vmem:[#allocation7 + $0x1c0] sm:$0xff] %v1217_v24  ;;  %1510 = vst [vmem:[#allocation7 + $0x1d0] sm:$0xff] %v1443_v25  ;;  %v1219_v26 = vpop.f32.mrb[29].mxu0  ;;  %v1445_v27 = vpop.f32.mrb[29].mxu1 }
 0x1b4   :  { %1509 = vst [vmem:[#allocation7 + $0x1c8] sm:$0xff] %v1219_v26  ;;  %1511 = vst [vmem:[#allocation7 + $0x1d8] sm:$0xff] %v1445_v27  ;;  %v1221_v28 = vpop.f32.mrb[30].mxu0  ;;  %v1447_v29 = vpop.f32.mrb[30].mxu1 }
 0x1b5   :  { %1512 = vst [vmem:[#allocation7 + $0x1e0] sm:$0xff] %v1221_v28  ;;  %1514 = vst [vmem:[#allocation7 + $0x1f0] sm:$0xff] %v1447_v29  ;;  %v1223_v30 = vpop.f32.mrb[31].mxu0  ;;  %v1449_v31 = vpop.f32.mrb[31].mxu1 }
 0x1b6   :  { %1513 = vst [vmem:[#allocation7 + $0x1e8] sm:$0xff] %v1223_v30  ;;  %1515 = vst [vmem:[#allocation7 + $0x1f8] sm:$0xff] %v1449_v31 }
 0x1b7   :  { %2060 = shalt.err (!%p2057_p6)
}
 0x1b8   :  { %s2061_s10 = scalar_lea.hbm %s2137_s2, 8192 }
 0x1b9   :  { %p2062_p7 = scmp.ne.s32.totalorder %s2137_s2, %s2061_s10  ;;  %p2065_p8 = scmp.lt.u32.totalorder %s2061_s10, %s2137_s2 }
 0x1bb   :  { %p2067_p9 = pnand %p2065_p8, %p2062_p7 }
 0x1bd   :  { %2070 = shalt.err (!%p2067_p9)
}
 0x1be   :  { %s2082_s15 = smov 512   ;;  %s2083_s16 = smov 32  }
 0x1bf   :  { %1527 = dma.vmem_to_hbm [thread:$0]  %s1522_s6, 8192, %s2137_s2, [#allocation4], %s2082_s15, %s2082_s15, %s2083_s16  }
 0x1c0   :  { %2075 = dma.done.wait [#allocation4], 8192  }
 0x1c1   :  { %2076 = vsyncadd [#allocation4], 4294959104 }
 0x1c2   :  { %1531 = vsyncpa [#allocation3], 1 }
 0x1c3   :  { %1532 = vsyncpa [#allocation6], 1 }
 0x1c4   :  { %1533 = vsyncpa [#allocation4], 1 }

</bundles_post_ra>
